<compile_context>
chip_gen: v5e
topology: v5e:2x2
jax: 0.10.0
libtpu: 0.0.40
codegen_flags: <defaults>
</compile_context>

<pallas_src>
import jax
import jax.numpy as jnp
from jax.experimental import pallas as pl
from jax.experimental.pallas import tpu as pltpu


def _gconv_last_vpu_kernel(w_ref, v_ref, b_ref, o_ref, acc_ref):
    """OUT == 1 path: VPU multiply + deferred cross-lane reduction (no MXU).

    w_ref:   (bb, tm, tk)   block of W.reshape(B, N, K), caller dtype (f32/bf16/int8)
    v_ref:   (bb, 1,  tk)   fused rhs (f32): v[b, m*J+j] = sum_f x[b,m,f] * fc_w[0, j*F+f]
    b_ref:   (1,)           fc bias, f32, SMEM
    o_ref:   (bb, tm, 1)    f32 output rows
    acc_ref: (bb, tm, 128)  f32 per-lane partial sums (VMEM scratch, lives across k)
    """
    k = pl.program_id(2)

    @pl.when(k == 0)
    def _init():
        acc_ref[...] = jnp.zeros_like(acc_ref)

    tk = w_ref.shape[-1]
    nfull, rem = divmod(tk, 128)
    vv = v_ref[...].astype(jnp.float32)        # (bb, 1, tk): tiny, loaded once per step

    def col(c):
        """f32 per-lane partial products of one full 128-lane W column block."""
        sl = slice(c * 128, (c + 1) * 128)
        # Per-vreg widening of W (handles bf16/int8 and keeps v5e off the bf16-less
        # VALU path); v broadcasts across the tm (sublane) axis.
        return w_ref[:, :, sl].astype(jnp.float32) * vv[:, :, sl]

    # Accumulator is read/written once per PAIR of columns: halves VMEM ld/st pressure
    # so the loop stays under the HBM stream even on v7x's 3.2 TB/s.
    for c in range(0, nfull - 1, 2):
        acc_ref[...] += col(c) + col(c + 1)
    if nfull % 2:
        acc_ref[...] += col(nfull - 1)
    if rem:  # ragged tail when K = N*J is not a multiple of 128
        sl = slice(nfull * 128, tk)
        acc_ref[:, :, :rem] += w_ref[:, :, sl].astype(jnp.float32) * vv[:, :, sl]

    @pl.when(k == pl.num_programs(2) - 1)
    def _finish():
        # Single deferred cross-lane reduce (XLU) + bias + cast, once per row block.
        red = jnp.sum(acc_ref[...], axis=-1, keepdims=True)          # (bb, tm, 1)
        o_ref[...] = (red + b_ref[0]).astype(o_ref.dtype)


def _gconv_last_mxu_kernel(w_ref, v_ref, b_ref, o_ref, acc_ref):
    """General OUT > 1 fallback (unused by the GNN, whose last layer has OUT == 1)."""
    k = pl.program_id(2)

    @pl.when(k == 0)
    def _init():
        acc_ref[...] = jnp.zeros_like(acc_ref)

    acc_ref[...] += jnp.einsum("bok,btk->bot", v_ref[...], w_ref[...],
                               preferred_element_type=jnp.float32)

    @pl.when(k == pl.num_programs(2) - 1)
    def _finish():
        o_ref[...] = (acc_ref[...] + b_ref[...]).astype(o_ref.dtype)


def _pick_tile(dim, max_tile, quantum):
    """Largest multiple of `quantum` that divides `dim` and is <= max_tile; falls back to
    the full axis (always a legal Pallas block extent)."""
    if dim <= max_tile:
        return dim
    t = (max_tile // quantum) * quantum
    while t >= quantum:
        if dim % t == 0:
            return t
        t -= quantum
    return dim


def _vmem_capacity_bytes():
    """Physical VMEM per TensorCore; conservative v7x-sized fallback if the query fails."""
    try:
        cap = getattr(pltpu.get_tpu_info(), "vmem_capacity_bytes", None)
        if cap:
            return int(cap)
    except Exception:
        pass
    return 64 << 20


def gconv_last(W, x, fc_w, fc_b, *, bb=None, tm=None, tk=None, w_block_budget_bytes=None):
    """Forward pass of Gconv_last. Returns (W, x_out) like the torch module.

    Caller contract: pass W already narrowed (bf16, or int8 for adjacency-like operators)
    when possible - the kernel widens per-vreg and accumulates in f32; the wrapper never
    casts W (that would cost a full extra HBM round trip of the dominant operand).
    """
    B, N, N2, J = W.shape
    assert N2 == N
    F = x.shape[-1]
    OUT, JF = fc_w.shape
    assert JF == J * F
    K = N * J
    out_dtype = x.dtype
    itemsize = jnp.dtype(W.dtype).itemsize

    # ---- fuse nn.Linear into gmul (tiny precompute on x; W untouched in HBM) ----
    #   y[b,n,o] = sum_{m,j} W[b,n,m,j] * v[b,o,m*J+j] + bias[o]
    #   v[b,o,m*J+j] = sum_f x[b,m,f] * fc_w[o, j*F+f]
    # v stays f32: it is ~N*itemsize/4 times smaller than W, and keeping it wide avoids
    # rounding the pre-reduced operand.
    wfc = fc_w.reshape(OUT, J, F)
    v = jnp.einsum("bmf,ojf->bomj", x, wfc,
                   preferred_element_type=jnp.float32).reshape(B, OUT, K)
    w_flat = W.reshape(B, N, K)      # free reshape: collapses contiguous trailing axes

    # ---- generation-aware VMEM policy ----
    vmem_cap = _vmem_capacity_bytes()
    # ~102 MiB ceiling on v5e/v6e (128 MiB VMEM); 48 MiB on v7x (64 MiB/TC, 16 MiB headroom)
    vmem_ceiling = max(32 << 20, min(int(0.8 * vmem_cap), vmem_cap - (16 << 20)))
    if w_block_budget_bytes is None:
        w_block_budget_bytes = (28 << 20) if vmem_cap >= (96 << 20) else (16 << 20)
    # Never let the per-block budget push the (double-buffered) footprint past the ceiling.
    blk_budget = min(w_block_budget_bytes, max(1 << 20, (vmem_ceiling - (6 << 20)) // 2))

    # ---- tile selection (auto unless overridden) ----
    # tm sits on the sublane axis -> only needs the dtype sublane quantum (8/16/32);
    # tk is the lane axis -> multiples of 128 (or the full K).
    q_tm = max(8, 32 // itemsize) if OUT == 1 else 128
    if bb is None:
        bb = 1
        if B > 2 and B * N * K * itemsize <= (1 << 20):
            # Tiny problem: fold batches to amortize the ~0.35us/step grid overhead, but
            # keep the batch grid axis >= 2 so both v7x TensorCores participate.
            for cand in range(B // 2, 0, -1):
                if B % cand == 0:
                    bb = cand
                    break
    if tm is None:
        max_tm = max(q_tm, blk_budget // max(1, bb * K * itemsize))
        if B // bb == 1:
            # Batch axis collapsed: let the row axis provide the >=2 "parallel" extent.
            max_tm = min(max_tm, max(q_tm, N // 2))
        tm = _pick_tile(N, max_tm, q_tm)
    if tk is None:
        if bb * tm * K * itemsize > blk_budget:
            max_tk = max(128, blk_budget // max(1, bb * tm * itemsize))
            tk = _pick_tile(K, max_tk, 128)
        else:
            tk = K
    assert B % bb == 0 and N % tm == 0 and K % tk == 0, (bb, tm, tk)

    grid = (B // bb, N // tm, K // tk)

    # ---- VMEM budget: double-buffered ins/outs + accumulator + slack; never below need ----
    w_blk = bb * tm * tk * itemsize
    if OUT == 1:
        v_blk = bb * tk * 4
        o_blk = bb * tm * 4
        acc_b = bb * tm * 128 * 4
    else:
        v_blk = bb * OUT * tk * itemsize
        o_blk = bb * OUT * tm * jnp.dtype(out_dtype).itemsize
        acc_b = bb * OUT * tm * 4
    need = 2 * (w_blk + v_blk + o_blk) + acc_b + (4 << 20)
    vmem_limit = int(min(max(32 << 20, need), max(vmem_ceiling, need)))
    vmem_limit = int(max(16 << 20, min(vmem_limit, vmem_cap - (8 << 20))))

    cost = pl.CostEstimate(
        flops=int(2 * B * N * K * OUT),
        transcendentals=0,
        bytes_accessed=int(B * N * K * itemsize + B * OUT * K * 4 + B * N * OUT * 4))

    cparams = pltpu.CompilerParams(
        dimension_semantics=("parallel", "parallel", "arbitrary"),
        vmem_limit_bytes=vmem_limit)

    if OUT == 1:
        bias = fc_b.astype(jnp.float32).reshape(1)
        out = pl.pallas_call(
            _gconv_last_vpu_kernel,
            out_shape=jax.ShapeDtypeStruct((B, N, 1), jnp.float32),
            grid=grid,
            in_specs=[
                pl.BlockSpec((bb, tm, tk), lambda b, i, k: (b, i, k)),
                pl.BlockSpec((bb, 1, tk), lambda b, i, k: (b, 0, k)),
                pl.BlockSpec(memory_space=pltpu.MemorySpace.SMEM),
            ],
            out_specs=pl.BlockSpec((bb, tm, 1), lambda b, i, k: (b, i, 0)),
            scratch_shapes=[pltpu.VMEM((bb, tm, 128), jnp.float32)],
            compiler_params=cparams,
            cost_estimate=cost,
        )(w_flat, v, bias)
        x_out = out.reshape(B, N).astype(out_dtype)   # torch .squeeze(2): free reshape
    else:
        # General (non-GNN) case: a real output width -> MXU path; operands are
        # dtype-matched only because they feed the MXU.
        bias = fc_b.astype(jnp.float32).reshape(OUT, 1)
        out = pl.pallas_call(
            _gconv_last_mxu_kernel,
            out_shape=jax.ShapeDtypeStruct((B, OUT, N), out_dtype),
            grid=grid,
            in_specs=[
                pl.BlockSpec((bb, tm, tk), lambda b, i, k: (b, i, k)),
                pl.BlockSpec((bb, OUT, tk), lambda b, i, k: (b, 0, k)),
                pl.BlockSpec((OUT, 1), lambda b, i, k: (0, 0)),
            ],
            out_specs=pl.BlockSpec((bb, OUT, tm), lambda b, i, k: (b, 0, i)),
            scratch_shapes=[pltpu.VMEM((bb, OUT, tm), jnp.float32)],
            compiler_params=cparams,
            cost_estimate=cost,
        )(w_flat, v.astype(W.dtype), bias)
        x_out = jnp.transpose(out, (0, 2, 1))
    return W, x_out


def ref_forward(W, x, fc_w, fc_b):
    """Pure-JAX mirror of the PyTorch Gconv_last forward (gmul -> Linear -> squeeze)."""
    B, N, _, J = W.shape
    F = x.shape[-1]
    OUT = fc_w.shape[0]
    W32 = W.astype(jnp.float32)
    x32 = x.astype(jnp.float32)
    g = jnp.einsum("bnmj,bmf->bnjf", W32, x32).reshape(B, N, J * F)
    y = g @ fc_w.astype(jnp.float32).T + fc_b.astype(jnp.float32)
    if OUT == 1:
        y = y[:, :, 0]
    return W, y


if __name__ == "__main__":
    def make_inputs(key, B, N, F, J, OUT, dtype):
        kW, kx, kw, kb = jax.random.split(key, 4)
        W = jax.random.normal(kW, (B, N, N, J), dtype=jnp.float32)
        x = jax.random.normal(kx, (B, N, F), dtype=jnp.float32)
        fan_in = J * F
        bound = 1.0 / (fan_in ** 0.5)   # nn.Linear-style U(-1/sqrt(fan_in), 1/sqrt(fan_in))
        fc_w = jax.random.uniform(kw, (OUT, fan_in), jnp.float32, -bound, bound)
        fc_b = jax.random.uniform(kb, (OUT,), jnp.float32, -bound, bound)
        return (W.astype(dtype), x.astype(dtype),
                fc_w.astype(dtype), fc_b.astype(dtype))

    key = jax.random.PRNGKey(0)
    kA, kB, kC, kD = jax.random.split(key, 4)

    # (A) tiny shapes implied by the module's last layer: single k step, ragged K=32 tail,
    #     batch folded to bb=2 while keeping the batch grid axis >= 2 (megacore), f32.
    B, N, F, J, OUT = 4, 16, 8, 2, 1
    W, x, fc_w, fc_b = make_inputs(kA, B, N, F, J, OUT, jnp.float32)
    _, y = gconv_last(W, x, fc_w, fc_b)
    jax.block_until_ready(y)
    _, y_ref = ref_forward(W, x, fc_w, fc_b)
    assert y.shape == (B, N), y.shape
    assert jnp.allclose(y, y_ref, atol=1e-4, rtol=1e-4)

    # (B) forced tiling over batch / rows / contraction (f32) to exercise k-axis
    #     accumulation and the paired-column VPU loop: grid = (2, 2, 2).
    B, N, F, J, OUT = 2, 256, 8, 2, 1
    W, x, fc_w, fc_b = make_inputs(kB, B, N, F, J, OUT, jnp.float32)
    _, y = gconv_last(W, x, fc_w, fc_b, bb=1, tm=128, tk=256)
    jax.block_until_ready(y)
    _, y_ref = ref_forward(W, x, fc_w, fc_b)
    assert y.shape == (B, N), y.shape
    assert jnp.allclose(y, y_ref, atol=1e-3, rtol=1e-3)

    # (C) bf16-streamed W (half the HBM traffic - the recommended caller contract),
    #     f32 v and f32 accumulation, same forced tiling.
    W, x, fc_w, fc_b = make_inputs(kC, B, N, F, J, OUT, jnp.bfloat16)
    _, y = gconv_last(W, x, fc_w, fc_b, bb=1, tm=128, tk=256)
    jax.block_until_ready(y)
    _, y_ref = ref_forward(W, x, fc_w, fc_b)
    assert y.shape == (B, N), y.shape
    assert jnp.allclose(y.astype(jnp.float32), y_ref, atol=1e-1, rtol=3e-2)

    # (D) non-128-aligned node count: sublane-quantum row tiles (tm=40) and a ragged
    #     K=160 contraction (128 + 32 tail), f32.
    B, N, F, J, OUT = 2, 80, 8, 2, 1
    W, x, fc_w, fc_b = make_inputs(kD, B, N, F, J, OUT, jnp.float32)
    _, y = gconv_last(W, x, fc_w, fc_b, bb=1, tm=40)
    jax.block_until_ready(y)
    _, y_ref = ref_forward(W, x, fc_w, fc_b)
    assert y.shape == (B, N), y.shape
    assert jnp.allclose(y, y_ref, atol=1e-3, rtol=1e-3)

    print("KERNEL_OK")
</pallas_src>

<mosaic_0001>
module attributes {stable_mosaic.version = 11 : i64} {
  func.func @_gconv_last_vpu_kernel(%arg0: i32, %arg1: i32, %arg2: i32, %arg3: memref<2x16x32xf32, #tpu.memory_space<vmem>>, %arg4: memref<2x1x32xf32, #tpu.memory_space<vmem>>, %arg5: memref<1xf32, #tpu.memory_space<smem>>, %arg6: memref<2x16x1xf32, #tpu.memory_space<vmem>>, %arg7: memref<2x16x128xf32, #tpu.memory_space<vmem>>) attributes {dimension_semantics = [#tpu.dimension_semantics<parallel>, #tpu.dimension_semantics<parallel>, #tpu.dimension_semantics<arbitrary>], iteration_bounds = array<i64: 2, 1, 1>, scalar_prefetch = 0 : i64, scratch_operands = 1 : i64, tpu.core_type = #tpu.core_type<tc>, window_params = [{transform_indices = @transform_0, window_bounds = array<i64: 2, 16, 32>}, {transform_indices = @transform_1, window_bounds = array<i64: 2, 1, 32>}, {transform_indices = @transform_2, window_bounds = array<i64: 1>}, {transform_indices = @transform_3, window_bounds = array<i64: 2, 16, 1>}]} {
    %c0_i32 = arith.constant 0 : i32
    %0 = arith.cmpi eq, %arg2, %c0_i32 : i32
    %1 = arith.extui %0 : i1 to i32
    %c0_i32_0 = arith.constant 0 : i32
    %2 = arith.cmpi ne, %1, %c0_i32_0 : i32
    scf.if %2 {
      %cst = arith.constant 0.000000e+00 : f32
      %13 = vector.broadcast %cst : f32 to vector<2x16x128xf32>
      %c0_14 = arith.constant 0 : index
      %c0_15 = arith.constant 0 : index
      %c0_16 = arith.constant 0 : index
      %14 = vector.load %arg7[%c0_14, %c0_15, %c0_16] : memref<2x16x128xf32, #tpu.memory_space<vmem>>, vector<2x16x128xf32>
      tpu.vector_store %arg7[%c0_14, %c0_15, %c0_16], %13 {strides = array<i32>} : memref<2x16x128xf32, #tpu.memory_space<vmem>>, vector<2x16x128xf32>,
    } else {
    }
    %c0 = arith.constant 0 : index
    %c0_1 = arith.constant 0 : index
    %c0_2 = arith.constant 0 : index
    %3 = vector.load %arg4[%c0, %c0_1, %c0_2] : memref<2x1x32xf32, #tpu.memory_space<vmem>>, vector<2x1x32xf32>
    %c0_3 = arith.constant 0 : index
    %c0_4 = arith.constant 0 : index
    %c0_5 = arith.constant 0 : index
    %4 = vector.load %arg7[%c0_3, %c0_4, %c0_5] : memref<2x16x128xf32, #tpu.memory_space<vmem>>, vector<2x16x32xf32>
    %c0_6 = arith.constant 0 : index
    %c0_7 = arith.constant 0 : index
    %c0_8 = arith.constant 0 : index
    %5 = vector.load %arg3[%c0_6, %c0_7, %c0_8] : memref<2x16x32xf32, #tpu.memory_space<vmem>>, vector<2x16x32xf32>
    %6 = vector.broadcast %3 : vector<2x1x32xf32> to vector<2x16x32xf32>
    %7 = arith.mulf %5, %6 : vector<2x16x32xf32>
    %8 = arith.addf %4, %7 : vector<2x16x32xf32>
    %c0_9 = arith.constant 0 : index
    %c0_10 = arith.constant 0 : index
    %c0_11 = arith.constant 0 : index
    %9 = vector.load %arg7[%c0_9, %c0_10, %c0_11] : memref<2x16x128xf32, #tpu.memory_space<vmem>>, vector<2x16x32xf32>
    tpu.vector_store %arg7[%c0_9, %c0_10, %c0_11], %8 {strides = array<i32>} : memref<2x16x128xf32, #tpu.memory_space<vmem>>, vector<2x16x32xf32>,
    %c0_i32_12 = arith.constant 0 : i32
    %10 = arith.cmpi eq, %arg2, %c0_i32_12 : i32
    %11 = arith.extui %10 : i1 to i32
    %c0_i32_13 = arith.constant 0 : i32
    %12 = arith.cmpi ne, %11, %c0_i32_13 : i32
    scf.if %12 {
      %c0_14 = arith.constant 0 : index
      %c0_15 = arith.constant 0 : index
      %c0_16 = arith.constant 0 : index
      %13 = vector.load %arg7[%c0_14, %c0_15, %c0_16] : memref<2x16x128xf32, #tpu.memory_space<vmem>>, vector<2x16x128xf32>
      %cst = arith.constant dense<0.000000e+00> : vector<2x16xf32>
      %14 = vector.multi_reduction <add>, %13, %cst [2] : vector<2x16x128xf32> to vector<2x16xf32>
      %15 = vector.shape_cast %14 : vector<2x16xf32> to vector<2x16x1xf32>
      %c0_17 = arith.constant 0 : index
      %16 = memref.load %arg5[%c0_17] : memref<1xf32, #tpu.memory_space<smem>>
      %17 = vector.broadcast %16 : f32 to vector<2x16x1xf32>
      %18 = arith.addf %15, %17 : vector<2x16x1xf32>
      %c0_18 = arith.constant 0 : index
      %c0_19 = arith.constant 0 : index
      %c0_20 = arith.constant 0 : index
      %19 = vector.load %arg6[%c0_18, %c0_19, %c0_20] : memref<2x16x1xf32, #tpu.memory_space<vmem>>, vector<2x16x1xf32>
      tpu.vector_store %arg6[%c0_18, %c0_19, %c0_20], %18 {strides = array<i32>} : memref<2x16x1xf32, #tpu.memory_space<vmem>>, vector<2x16x1xf32>,
    } else {
    }
    return
  }
  func.func @transform_0(%arg0: i32, %arg1: i32, %arg2: i32) -> (i32, i32, i32) {
    %c0_i32 = arith.constant 0 : i32
    return %arg0, %arg1, %arg2 : i32, i32, i32
  }
  func.func @transform_1(%arg0: i32, %arg1: i32, %arg2: i32) -> (i32, i32, i32) {
    %c0_i32 = arith.constant 0 : i32
    %c0_i32_0 = arith.constant 0 : i32
    return %arg0, %c0_i32, %arg2 : i32, i32, i32
  }
  func.func @transform_2(%arg0: i32, %arg1: i32, %arg2: i32) -> i32 {
    %c0_i32 = arith.constant 0 : i32
    %c0_i32_0 = arith.constant 0 : i32
    return %c0_i32 : i32
  }
  func.func @transform_3(%arg0: i32, %arg1: i32, %arg2: i32) -> (i32, i32, i32) {
    %c0_i32 = arith.constant 0 : i32
    %c0_i32_0 = arith.constant 0 : i32
    return %arg0, %arg1, %c0_i32 : i32, i32, i32
  }
}

</mosaic_0001>

<bundles_post_ra>
// kernel: tpu_custom_call.1
= control target key start
LH: loop header
LB: loop body
LE: loop exit
PB: predicated region body
PF: predicated region fallthrough
CT: control target
= control target key end

     0   :  { %s812_s0 = inlined_call_operand.hbm [shape: f32[4,16,32], index: 0, kind: input, shape index: {}]   ;;  %s813_s1 = inlined_call_operand.hbm [shape: f32[4,1,32], index: 1, kind: input, shape index: {}]   ;;  %s814_s2 = inlined_call_operand.<no memory space> [shape: f32[1], index: 2, kind: input, shape index: {}]   ;;  %s815_s3 = inlined_call_operand.vmem [shape: f32[4,16,1], index: 3, kind: output, shape index: {}]  }
   0x1   :  { %8 = sst [smem:[#allocation3]] %s814_s2 }
   0x2   :  { %9 = vsyncpa [#allocation5], 0 }
   0x3   :  { %11 = vsyncpa [#allocation5 + $0x1], 0 }
   0x4   :  { %12 = vsyncpa [#allocation7], 0 }
   0x5   :  { %14 = vsyncpa [#allocation7 + $0x1], 0  ;;  %s703_s14 = smov 0   ;;  %s705_s15 = smov 0  }
   0x6   :  { %s707_s16 = smov 0   ;;  %s709_s17 = smov 0  }
   0x7   :  { %s711_s18 = smov 0   ;;  %s713_s19 = smov 0  }
   0x8 LB: > { %s471_s2 = sadd.s32 4294967295, %s673_s19   ;;  %s39_s20 = sadd.s32 1, %s669_s18  ;;  %s673_s19 = sphi %s713_s19, %s20_s19   ;;  %s669_s18 = sphi %s711_s18, %s823_s18   ;;  %s665_s17 = sphi %s709_s17, %s822_s17   ;;  %s661_s16 = sphi %s707_s16, %s821_s16   ;;  %s657_s15 = sphi %s705_s15, %s820_s15   ;;  %s653_s14 = sphi %s703_s14, %s819_s14  }
   0x9   : > { %p41_p0 = scmp.ge.s32.totalorder %s39_s20, 2  ;;  %s50_s21 = sadd.s32 1, %s661_s16 }
   0xa   : > { %p57_p1 = scmp.ne.s32.totalorder %s661_s16, %s657_s15  ;;  %p58_p2 = scmp.eq.s32.totalorder %s673_s19, 0 }
   0xb   : > { %s825_s20 = smov (%p41_p0, %s39_s20), 0  ;;  %p63_p4 = scmp.ne.s32.totalorder %s657_s15, %s653_s14 }
   0xc   : > { %p739_p3 = por %p58_p2, %p57_p1  ;;  %s43_s23 = ssub.s32 %s669_s18, %s825_s20 }
   0xd   : > { %p64_p5 = scmp.eq.s32.totalorder %s471_s2, 0  ;;  %p48_p6 = scmp.eq.s32.totalorder %s43_s23, 0 }
   0xe   : > { %p503_p8 = scmp.lt.s32.totalorder %s673_s19, 2  ;;  %s755_s26 = sand.u32 1, %s661_s16  }
   0xf   : > { %p746_p7 = por %p64_p5, %p63_p4  ;;  %s490_s27 = sshll.u32 %s669_s18, 5 }
  0x10   : > { %s752_s25 = scalar_select %p48_p6, %s661_s16, %s50_s21  }
  0x11   : > { %s475_s28 = sshll.u32 %s755_s26, 5  ;;  %s180_s4 = scalar_lea.hbm %s812_s0, %s490_s27 }
  0x12   : > { %s181_s5 = sshll.u32 %s180_s4, 4  ;;  %s171_s6 = scalar_lea.vmem [#allocation4], %s475_s28  ;;  %s182_s5 = int_to_ptr.hbm [resolvable:$true] %s181_s5 }
  0x13   : > { %s183_s7 = sshll.u32 %s171_s6, 4  ;;  %p764_p9 = pnand %p503_p8, %p739_p3  ;;  %s184_s7 = int_to_ptr.vmem [resolvable:$true] %s183_s7 }
  0x14   : > { %p481_p10 = scmp.ge.s32.totalorder %s673_s19, 1  ;;  %p213_p11 = scmp.lt.s32.totalorder %s673_s19, 3 }
  0x15   : > { %s168_s9 = scalar_lea.sflag [#allocation5], %s755_s26  ;;  %s675_s10 = smov 128  }
  0x16   : > { %s676_s11 = smov 8   ;;  %p214_p12 = pnand %p481_p10, %p213_p11 }
  0x17   : > { %499 = dma.hbm_to_vmem [thread:$0]  (!%p764_p9), %s182_s5, 512, %s184_s7, %s168_s9, %s675_s10, %s675_s10, %s676_s11  }
  0x18   : > { %s479_s12 = sshll.u32 %s755_s26, 1  ;;  %s480_s13 = sshll.u32 %s669_s18, 1 }
  0x19   : > { %s202_s21 = scalar_lea.hbm %s813_s1, %s480_s13  ;;  %s197_s23 = scalar_lea.vmem [#allocation6], %s479_s12 }
  0x1a   : > { %s203_s22 = sshll.u32 %s202_s21, 4  ;;  %s205_s27 = sshll.u32 %s197_s23, 4  ;;  %s204_s22 = int_to_ptr.hbm [resolvable:$true] %s203_s22  ;;  %s206_s27 = int_to_ptr.vmem [resolvable:$true] %s205_s27 }
  0x1b   : > { %s194_s28 = scalar_lea.sflag [#allocation7], %s755_s26  ;;  %s677_s29 = smov 16  }
  0x1c   : > { %s678_s30 = smov 1   ;;  %217 = sbr.rel (%p214_p12) target bundleno = 178 (0xb2), region = 32 }
  0x1d   : > { %502 = dma.hbm_to_vmem [thread:$0]  (!%p764_p9), %s204_s22, 32, %s206_s27, %s194_s28, %s677_s29, %s677_s29, %s678_s30  }
  0x1e   : > { %s219_s4 = sand.u32 (!%p214_p12), 1, %s657_s15  }
  0x1f   : > { %s482_s5 = sshll.u32 (!%p214_p12), %s219_s4, 5  ;;  %s220_s6 = scalar_lea.sflag (!%p214_p12), [#allocation5], %s219_s4 }
  0x20   : > { %s223_s7 = scalar_lea.vmem (!%p214_p12), [#allocation4], %s482_s5 }
  0x21   : > { %644 = dma.done.wait (%p746_p7), %s220_s6, 512  }
  0x22   : > { %646 = vsyncadd (%p746_p7), %s220_s6, 4294966784  ;;  %s483_s9 = sshll.u32 %s219_s4, 1  ;;  %s230_s10 = scalar_lea.sflag [#allocation7], %s219_s4 }
  0x23   : > { %s233_s26 = scalar_lea.vmem [#allocation6], %s483_s9 }
  0x24   : > { %648 = dma.done.wait (%p746_p7), %s230_s10, 32  }
  0x25   : > { %650 = vsyncadd (%p746_p7), %s230_s10, 4294967264  ;;  %v679_v0 = vmov 0.0   ;;  %v296_v1 = vld [vmem:[%s223_s7] sm:$0xff]  ;;  %v298_v3 = vld [vmem:[%s223_s7 + $0x10] sm:$0xff]  ;;  %vm314_vm0 = vcmask 261120   ;;  %s484_s24 = sshll.u32 %s665_s17, 1 }
  0x26   : > { %286 = vst [vmem:[#allocation2] sm:$0xff] %v679_v0  ;;  %v557_v2 = vld [vmem:[%s233_s26] ss:$0 sm:$0xff]  ;;  %v558_v4 = vld [vmem:[%s233_s26 + $0x1] ss:$0 sm:$0xff]  ;;  %v297_v6 = vld [vmem:[%s223_s7 + $0x8] sm:$0xff] }
  0x27   : > { %287 = vst [vmem:[#allocation2 + $0x8] sm:$0xff] %v679_v0  ;;  %v306_v5 = vmul.f32 %v557_v2, %v296_v1  ;;  %v299_v7 = vld [vmem:[%s223_s7 + $0x18] sm:$0xff]  ;;  %v308_v8 = vmul.f32 %v558_v4, %v298_v3  ;;  %v307_v9 = vmul.f32 %v557_v2, %v297_v6  ;;  %p272_p13 = scmp.lt.s32.totalorder %s484_s24, 3  ;;  %s334_s8 = sld [smem:[#allocation3]]  ;;  %vm340_vm1 = vcmask 7168  }
  0x28   : > { %288 = vst [vmem:[#allocation2 + $0x10] sm:$0xff] %v679_v0  ;;  %v309_v10 = vmul.f32 %v558_v4, %v299_v7 }
  0x29   : > { %289 = vst [vmem:[#allocation2 + $0x18] sm:$0xff] %v679_v0  ;;  %s827_s24 = smov (!%p272_p13, %s484_s24), 3 }
  0x2a   : > { %315 = vst.msk [vmem:[#allocation2] sm:$0xff] %vm314_vm0, %v306_v5  ;;  %s491_s11 = sshll.u32 %s827_s24, 4 }
  0x2b   : > { %317 = vst.msk [vmem:[#allocation2 + $0x10] sm:$0xff] %vm314_vm0, %v308_v8  ;;  %s279_s14 = scalar_lea.vmem %s815_s3, %s491_s11 }
  0x2c   : > { %316 = vst.msk [vmem:[#allocation2 + $0x8] sm:$0xff] %vm314_vm0, %v307_v9 }
  0x2d   : > { %318 = vst.msk [vmem:[#allocation2 + $0x18] sm:$0xff] %vm314_vm0, %v309_v10  ;;  %v335_v15 = vstv %s334_s8 }
  0x31   : > { %v322_v11 = vld [vmem:[#allocation2] sm:$0xff] }
  0x32   : > { %326 = vadd.xlane.f32.xlu0 %v322_v11  ;;  %v324_v12 = vld [vmem:[#allocation2 + $0x10] sm:$0xff] }
  0x33   : > { %330 = vadd.xlane.f32.xlu1 %v324_v12  ;;  %v323_v13 = vld [vmem:[#allocation2 + $0x8] sm:$0xff] }
  0x34   : > { %v325_v14 = vld [vmem:[#allocation2 + $0x18] sm:$0xff] }
  0x3a   : > { %328 = vadd.xlane.f32.xlu0 %v323_v13 }
  0x3b   : > { %332 = vadd.xlane.f32.xlu1 %v325_v14 }
  0xa5   : > { %v327_v16 = vpop.xlane.xlu0 %326 }
  0xa6   : > { %v336_v17 = vadd.f32 %v335_v15, %v327_v16  ;;  %v331_v18 = vpop.xlane.xlu1 %330 }
  0xa7   : > { %v338_v19 = vadd.f32 %v335_v15, %v331_v18 }
  0xa8   : > { %341 = vst.msk [vmem:[%s279_s14] sm:$0xff] %vm340_vm1, %v336_v17 }
  0xa9   : > { %343 = vst.msk [vmem:[%s279_s14 + $0x10] sm:$0xff] %vm340_vm1, %v338_v19 }
  0xad   : > { %v329_v20 = vpop.xlane.xlu0 %328 }
  0xae   : > { %v337_v21 = vadd.f32 %v335_v15, %v329_v20  ;;  %v333_v22 = vpop.xlane.xlu1 %332 }
  0xaf   : > { %v339_v23 = vadd.f32 %v335_v15, %v333_v22 }
  0xb0   : > { %342 = vst.msk [vmem:[%s279_s14 + $0x8] sm:$0xff] %vm340_vm1, %v337_v21 }
  0xb1   : > { %344 = vst.msk [vmem:[%s279_s14 + $0x18] sm:$0xff] %vm340_vm1, %v339_v23 }
  0xb2 PF: > { %s20_s19 = sadd.s32 1, %s673_s19   ;;  %s819_s14 = smov %s657_s15 }
  0xb3   : > { %p17_p0 = scmp.ge.s32.totalorder %s20_s19, 4   ;;  %s820_s15 = smov %s661_s16 }
  0xb4   : > { %s821_s16 = smov %s752_s25  ;;  %s822_s17 = smov %s669_s18 }
  0xb5   : > { %s823_s18 = smov %s825_s20  ;;  %19 = sbr.rel (!%p17_p0) target bundleno = 8 (0x8), region = 93 }
  0xba   :  { %378 = vsyncpa [#allocation5], 1 }
  0xbb   :  { %380 = vsyncpa [#allocation5 + $0x1], 1 }
  0xbc   :  { %381 = vsyncpa [#allocation7], 1 }
  0xbd   :  { %383 = vsyncpa [#allocation7 + $0x1], 1 }

</bundles_post_ra>
